<compile_context>
chip_gen: v5e
topology: v5e:2x2
jax: 0.10.0
libtpu: 0.0.40
codegen_flags: <defaults>
</compile_context>

<pallas_src>
import jax
import jax.numpy as jnp
from jax.experimental import pallas as pl
from jax.experimental.pallas import tpu as pltpu

_LANE = 128
_PER_BUFFER_BUDGET = 2 * 1024 * 1024   # ~2 MiB/buffer: roofline sweet spot, v7x-safe
_SMALL_TENSOR_BYTES = 1 << 20          # below this, don't force extra grid steps
_MIN_GRID_STEPS = 8                    # >= 2x TensorCores (v7x has 2) + pipeline depth
_VMEM_LIMIT = 32 * 1024 * 1024         # explicit scoped-VMEM limit, safe on all gens


def build_positional_encoding(d_model: int, max_len: int = 5000,
                              dtype=jnp.float32) -> jnp.ndarray:
    """Reproduces the module's __init__ exactly (same div_term exponent, same
    even/odd column handling), then casts ONCE to the model dtype so no
    per-forward cast is needed."""
    position = jnp.arange(0, max_len, dtype=jnp.float32)[:, None]           # (max_len, 1)
    half = d_model // 2
    div_term = jnp.exp(
        jnp.arange(0, half, dtype=jnp.float32) * -(jnp.log(10000.0) / d_model)
    )                                                                        # (half,)
    angles = position * div_term                                             # (max_len, half)
    enc = jnp.zeros((max_len, d_model), dtype=jnp.float32)
    enc = enc.at[:, 0:2 * half:2].set(jnp.sin(angles))
    enc = enc.at[:, 1:2 * half:2].set(jnp.cos(angles))
    return enc[None, :, :].astype(dtype)                                     # (1, max_len, d_model)


def _pe_add_kernel(x_ref, enc_ref, o_ref):
    # Lane/sublane-dense elementwise add on the VPU; enc broadcasts over the
    # leading (batch) dim in the flattened path and matches exactly in the 3-D path.
    o_ref[...] = x_ref[...] + enc_ref[...]


def _round_down_to(x: int, m: int) -> int:
    return max((x // m) * m, m)


def _sublane_pack(elem_bytes: int) -> int:
    # Rows packed per vreg along the sublane axis: 8 f32 / 16 bf16 / 32 int8.
    return max(32 // elem_bytes, 8)


def _choose_seq_tile(batch: int, seq: int, d_model: int, elem_bytes: int,
                     pack: int) -> int:
    """Seq-tile TM (multiple of the sublane pack) for the small-batch 3-D path."""
    per_row = d_model * elem_bytes
    tm = max(_PER_BUFFER_BUDGET // per_row, pack)
    tm = min(tm, seq)
    tm = _round_down_to(tm, pack)
    total_bytes = batch * seq * d_model * elem_bytes
    if total_bytes > _SMALL_TENSOR_BYTES:
        # Keep enough grid steps for megacore sharding + pipelining.
        while pl.cdiv(seq, tm) * batch < _MIN_GRID_STEPS and tm > pack:
            tm = _round_down_to(tm // 2, pack)
    return tm


def _choose_flat_chunk(batch: int, flat: int, elem_bytes: int) -> int:
    """Lane-dense chunk (multiple of 128) for the large-batch flattened path."""
    if flat <= _LANE:
        return flat
    chunk = max(_PER_BUFFER_BUDGET // (batch * elem_bytes), _LANE)
    chunk = min(chunk, flat)
    chunk = _round_down_to(chunk, _LANE)
    total_bytes = batch * flat * elem_bytes
    if total_bytes > _SMALL_TENSOR_BYTES:
        while pl.cdiv(flat, chunk) < _MIN_GRID_STEPS and chunk > _LANE:
            chunk = _round_down_to(chunk // 2, _LANE)
    return chunk


def positional_encoding_forward(x: jnp.ndarray, encoding: jnp.ndarray) -> jnp.ndarray:
    """x: (B, S, D); encoding: (1, max_len, D) -> (B, S, D), dtype = x.dtype."""
    B, S, D = x.shape
    if encoding.ndim != 3 or encoding.shape[0] != 1 or encoding.shape[2] != D:
        raise ValueError(f"encoding shape {encoding.shape} incompatible with x {x.shape}")
    max_len = encoding.shape[1]
    if S > max_len:
        raise ValueError(f"seq_len={S} exceeds positional-encoding max_len={max_len}")

    enc = encoding if encoding.dtype == x.dtype else encoding.astype(x.dtype)
    elem_bytes = jnp.dtype(x.dtype).itemsize
    pack = _sublane_pack(elem_bytes)

    cost = pl.CostEstimate(
        flops=B * S * D,
        transcendentals=0,
        bytes_accessed=(2 * B * S * D + S * D) * elem_bytes,
    )

    if B >= pack and S * D >= _LANE:
        # ---- large-batch path: lane-dense flattened (B, S*D) layout -------------
        # B fills the sublane axis on its own; flattening keeps lanes 100% dense.
        flat = S * D
        x2 = x.reshape(B, flat)
        enc2 = enc[:, :S, :].reshape(1, flat)     # relative cost <= 1/B of traffic here
        chunk = _choose_flat_chunk(B, flat, elem_bytes)
        grid = (pl.cdiv(flat, chunk),)
        out2 = pl.pallas_call(
            _pe_add_kernel,
            out_shape=jax.ShapeDtypeStruct((B, flat), x.dtype),
            grid_spec=pltpu.PrefetchScalarGridSpec(
                num_scalar_prefetch=0,
                grid=grid,
                in_specs=[
                    pl.BlockSpec((B, chunk), lambda c: (0, c)),   # all batch rows per chunk
                    pl.BlockSpec((1, chunk), lambda c: (0, c)),   # enc chunk fetched once
                ],
                out_specs=pl.BlockSpec((B, chunk), lambda c: (0, c)),
            ),
            compiler_params=pltpu.CompilerParams(
                dimension_semantics=("parallel",),
                vmem_limit_bytes=_VMEM_LIMIT,
            ),
            cost_estimate=cost,
        )(x2, enc2)
        return out2.reshape(B, S, D)

    # ---- small-batch path: 3-D (1, TM, D) blocks, sublane-dense ----------------
    tm = _choose_seq_tile(B, S, D, elem_bytes, pack)
    grid = (pl.cdiv(S, tm), B)   # batch is the fast (inner) axis -> enc tile revisited, no re-DMA
    return pl.pallas_call(
        _pe_add_kernel,
        out_shape=jax.ShapeDtypeStruct((B, S, D), x.dtype),
        grid_spec=pltpu.PrefetchScalarGridSpec(
            num_scalar_prefetch=0,
            grid=grid,
            in_specs=[
                pl.BlockSpec((1, tm, D), lambda s, b: (b, s, 0)),   # x tile
                pl.BlockSpec((1, tm, D), lambda s, b: (0, s, 0)),   # full table; no slice op
            ],
            out_specs=pl.BlockSpec((1, tm, D), lambda s, b: (b, s, 0)),
        ),
        compiler_params=pltpu.CompilerParams(
            dimension_semantics=("parallel", "parallel"),
            vmem_limit_bytes=_VMEM_LIMIT,
        ),
        cost_estimate=cost,
    )(x, enc)


if __name__ == "__main__":
    key = jax.random.PRNGKey(0)

    def _check(B, S, D, max_len, dtype=jnp.float32):
        enc = build_positional_encoding(D, max_len, dtype)
        kx = jax.random.fold_in(key, B * 1_000_000 + S * 1_000 + D)
        x = jax.random.normal(kx, (B, S, D), dtype=dtype)
        out = jax.block_until_ready(positional_encoding_forward(x, enc))
        ref = x + enc[:, :S, :]
        assert out.shape == (B, S, D)
        assert out.dtype == x.dtype
        assert jnp.allclose(out, ref, atol=1e-6), f"mismatch for shape {(B, S, D)}"

    # Primary, module-consistent small shapes (small batch -> 3-D sublane-dense path).
    _check(B=2, S=8, D=32, max_len=64)
    # Large-batch gate -> flattened lane-dense path.
    _check(B=16, S=16, D=32, max_len=64)
    # Multi-tile 3-D path (>1 MiB so the min-grid-steps / tiling logic is exercised).
    _check(B=2, S=1024, D=256, max_len=2048)

    print("KERNEL_OK")
</pallas_src>

<mosaic_0001>
module attributes {stable_mosaic.version = 11 : i64} {
  func.func @_pe_add_kernel(%arg0: i32, %arg1: i32, %arg2: memref<1x8x32xf32, #tpu.memory_space<vmem>>, %arg3: memref<1x8x32xf32, #tpu.memory_space<vmem>>, %arg4: memref<1x8x32xf32, #tpu.memory_space<vmem>>) attributes {dimension_semantics = [#tpu.dimension_semantics<parallel>, #tpu.dimension_semantics<parallel>], iteration_bounds = array<i64: 1, 2>, scalar_prefetch = 0 : i64, scratch_operands = 0 : i64, tpu.core_type = #tpu.core_type<tc>, window_params = [{transform_indices = @transform_0, window_bounds = array<i64: 1, 8, 32>}, {transform_indices = @transform_1, window_bounds = array<i64: 1, 8, 32>}, {transform_indices = @transform_2, window_bounds = array<i64: 1, 8, 32>}]} {
    %c0 = arith.constant 0 : index
    %c0_0 = arith.constant 0 : index
    %c0_1 = arith.constant 0 : index
    %0 = vector.load %arg2[%c0, %c0_0, %c0_1] : memref<1x8x32xf32, #tpu.memory_space<vmem>>, vector<1x8x32xf32>
    %c0_2 = arith.constant 0 : index
    %c0_3 = arith.constant 0 : index
    %c0_4 = arith.constant 0 : index
    %1 = vector.load %arg3[%c0_2, %c0_3, %c0_4] : memref<1x8x32xf32, #tpu.memory_space<vmem>>, vector<1x8x32xf32>
    %2 = arith.addf %0, %1 : vector<1x8x32xf32>
    %c0_5 = arith.constant 0 : index
    %c0_6 = arith.constant 0 : index
    %c0_7 = arith.constant 0 : index
    %3 = vector.load %arg4[%c0_5, %c0_6, %c0_7] : memref<1x8x32xf32, #tpu.memory_space<vmem>>, vector<1x8x32xf32>
    tpu.vector_store %arg4[%c0_5, %c0_6, %c0_7], %2 {strides = array<i32>} : memref<1x8x32xf32, #tpu.memory_space<vmem>>, vector<1x8x32xf32>,
    return
  }
  func.func @transform_0(%arg0: i32, %arg1: i32) -> (i32, i32, i32) {
    %c0_i32 = arith.constant 0 : i32
    %c0_i32_0 = arith.constant 0 : i32
    return %arg1, %arg0, %c0_i32 : i32, i32, i32
  }
  func.func @transform_1(%arg0: i32, %arg1: i32) -> (i32, i32, i32) {
    %c0_i32 = arith.constant 0 : i32
    %c0_i32_0 = arith.constant 0 : i32
    %c0_i32_1 = arith.constant 0 : i32
    return %c0_i32, %arg0, %c0_i32_0 : i32, i32, i32
  }
  func.func @transform_2(%arg0: i32, %arg1: i32) -> (i32, i32, i32) {
    %c0_i32 = arith.constant 0 : i32
    %c0_i32_0 = arith.constant 0 : i32
    return %arg1, %arg0, %c0_i32 : i32, i32, i32
  }
}

</mosaic_0001>

<bundles_post_ra>
// kernel: tpu_custom_call.1
= control target key start
LH: loop header
LB: loop body
LE: loop exit
PB: predicated region body
PF: predicated region fallthrough
CT: control target
= control target key end

     0   :  { %7 = vsyncpa [#allocation3], 0  ;;  %s546_s0 = inlined_call_operand.vmem [shape: f32[2,8,32], index: 0, kind: input, shape index: {}]   ;;  %s547_s1 = inlined_call_operand.vmem [shape: f32[1,64,32], index: 1, kind: input, shape index: {}]   ;;  %s548_s2 = inlined_call_operand.hbm [shape: f32[2,8,32], index: 2, kind: output, shape index: {}]  }
   0x1   :  { %9 = vsyncpa [#allocation3 + $0x1], 0  ;;  %s451_s9 = smov 0   ;;  %s453_s10 = smov 0  }
   0x2   :  { %s455_s11 = smov 0   ;;  %s457_s12 = smov 0  }
   0x3   :  { %s459_s13 = smov 0   ;;  %s461_s14 = smov 0  }
   0x4 LB: > { %s289_s15 = sadd.s32 4294967295, %s434_s14   ;;  %s290_s16 = sadd.s32 4294967294, %s434_s14   ;;  %s434_s14 = sphi %s461_s14, %s15_s14   ;;  %s430_s13 = sphi %s459_s13, %s555_s13   ;;  %s426_s12 = sphi %s457_s12, %s554_s12   ;;  %s422_s11 = sphi %s455_s11, %s553_s11   ;;  %s418_s10 = sphi %s453_s10, %s552_s10   ;;  %s414_s9 = sphi %s451_s9, %s551_s9  }
   0x5   : > { %s24_s17 = sadd.s32 1, %s430_s13  ;;  %s90_s18 = sadd.s32 1, %s422_s11 }
   0x6   : > { %p25_p0 = scmp.ge.s32.totalorder %s24_s17, 2  ;;  %p100_p1 = scmp.ne.s32.totalorder %s422_s11, %s418_s10 }
   0x7   : > { %p101_p2 = scmp.eq.s32.totalorder %s289_s15, 1  ;;  %p106_p3 = scmp.ne.s32.totalorder %s418_s10, %s414_s9 }
   0x8   : > { %s557_s17 = smov (%p25_p0, %s24_s17), 0  ;;  %p107_p5 = scmp.eq.s32.totalorder %s290_s16, 1 }
   0x9   : > { %p489_p4 = por %p101_p2, %p100_p1  ;;  %s85_s20 = ssub.s32 %s430_s13, %s557_s17 }
   0xa   : > { %p294_p6 = scmp.ge.s32.totalorder %s434_s14, 1  ;;  %p88_p7 = scmp.eq.s32.totalorder %s85_s20, 0 }
   0xb   : > { %p496_p8 = por %p107_p5, %p106_p3  ;;  %p142_p9 = scmp.lt.s32.totalorder %s434_s14, 3 }
   0xc   : > { %s502_s22 = scalar_select %p88_p7, %s422_s11, %s90_s18  }
   0xd   : > { %p143_p10 = pnand %p294_p6, %p142_p9 }
   0xe   : > { %s167_s23 = sand.u32 (!%p143_p10), 1, %s418_s10   ;;  %p170_p11 = scmp.lt.s32.totalorder (!%p143_p10), %s426_s12, 1 }
   0xf   : > { %146 = sbr.rel (%p143_p10) target bundleno = 33 (0x21), region = 28  ;;  %s295_s24 = sshll.u32 (!%p143_p10), %s167_s23, 3 }
  0x10   : > { %s298_s25 = sshll.u32 (!%p143_p10), %s426_s12, 3  ;;  %s169_s4 = scalar_lea.vmem (!%p143_p10), [#allocation2], %s295_s24 }
  0x11   : > { %s198_s28 = scalar_lea.hbm (!%p143_p10), %s548_s2, %s298_s25  ;;  %s200_s5 = sshll.u32 (!%p143_p10), %s169_s4, 4  ;;  %s201_s5 = int_to_ptr.vmem [resolvable:$true] %s200_s5 }
  0x12   : > { %s202_s15 = sshll.u32 (!%p143_p10), %s198_s28, 4  ;;  %s187_s16 = scalar_lea.sflag (!%p143_p10), [#allocation3], %s167_s23  ;;  %s203_s15 = int_to_ptr.hbm [resolvable:$true] %s202_s15 }
  0x13   : > { %s376_s25 = scalar_lea.hbm (!%p143_p10), %s548_s2, 16 }
  0x14   : > { %s559_s12 = smov (!%p170_p11, %s426_s12), 1  ;;  %v182_v0 = vld [vmem:[%s547_s1] sm:$0xff]  ;;  %vm184_vm0 = vcmask 261120  }
  0x15   : > { %s296_s29 = sshll.u32 %s559_s12, 3  ;;  %s370_s12 = sshra.s32 %s203_s15, 4  ;;  %s371_s12 = int_to_ptr.hbm [resolvable:$true] %s370_s12 }
  0x16   : > { %s176_s8 = scalar_lea.vmem %s546_s0, %s296_s29  ;;  %s372_s18 = scalar_lea.hbm %s371_s12, 8 }
  0x17   : > { %v181_v1 = vld [vmem:[%s176_s8] sm:$0xff]  ;;  %p373_p12 = scmp.ne.s32.totalorder %s371_s12, %s372_s18  ;;  %p377_p1 = scmp.lt.s32.totalorder %s371_s12, %s548_s2 }
  0x18   : > { %v183_v2 = vadd.f32 %v182_v0, %v181_v1  ;;  %p378_p2 = scmp.lt.s32.totalorder %s376_s25, %s372_s18 }
  0x19   : > { %p374_p13 = pnand %p373_p12, %p489_p4 }
  0x1a   : > { %185 = vst.msk [vmem:[%s169_s4] sm:$0xff] %vm184_vm0, %v183_v2  ;;  %p379_p3 = por %p378_p2, %p377_p1 }
  0x1b   : > { %p375_p0 = pneg %p374_p13 }
  0x1d   : > { %p380_p5 = pnand %p379_p3, %p375_p0 }
  0x1f   : > { %383 = shalt.err (!%p380_p5)
}
  0x20   : > { %301 = dma.vmem_to_hbm [thread:$0]  (%p489_p4), %s201_s5, 128, %s203_s15, %s187_s16  }
  0x21 PF: > { %p307_p6 = scmp.ge.s32.totalorder %s434_s14, 2  ;;  %s214_s23 = sand.u32 1, %s414_s9  }
  0x22   : > { %s215_s28 = scalar_lea.sflag [#allocation3], %s214_s23 }
  0x23   : > { %p304_p7 = pnand %p307_p6, %p496_p8 }
  0x25   : > { %p305_p9 = pneg %p304_p7 }
  0x27   : > { %409 = dma.done.wait (%p305_p9), %s215_s28, 128  }
  0x28   : > { %411 = vsyncadd (%p305_p9), %s215_s28, 4294967168  ;;  %s15_s14 = sadd.s32 1, %s434_s14   ;;  %s551_s9 = smov %s418_s10 }
  0x29   : > { %p12_p10 = scmp.ge.s32.totalorder %s15_s14, 4   ;;  %s552_s10 = smov %s422_s11 }
  0x2a   : > { %s553_s11 = smov %s502_s22  ;;  %s554_s12 = smov %s430_s13 }
  0x2b   : > { %s555_s13 = smov %s557_s17  ;;  %14 = sbr.rel (!%p12_p10) target bundleno = 4 (0x4), region = 66 }
  0x30   :  { %221 = vsyncpa [#allocation3], 1 }
  0x31   :  { %223 = vsyncpa [#allocation3 + $0x1], 1 }

</bundles_post_ra>
